<compile_context>
chip_gen: v7x
topology: tpu7x:2x2x1
jax: 0.10.0
libtpu: 0.0.40
codegen_flags: <defaults>
</compile_context>

<pallas_src>
import functools

import jax
import jax.numpy as jnp
from jax.experimental import pallas as pl
from jax.experimental.pallas import tpu as pltpu

IN_DIM = 68
HID_DIM = 30
OUT_DIM = 3
HIDDEN_NUMS = 3            # -> 2 residual blocks
BLOCK_LAYER_NUMS = 3       # -> 2 (linear, layernorm, relu) layers per block
NUM_BLOCKS = HIDDEN_NUMS - 1
LAYERS_PER_BLOCK = BLOCK_LAYER_NUMS - 1
N_LAYERS = NUM_BLOCKS * LAYERS_PER_BLOCK
LN_EPS = 1e-5

OUT_PAD = 128              # 3 -> 128: lane-dense (unmasked) output store


def resnn_kernel(x_ref, w_in_ref, b_in_ref, w_blk_ref, bgb_blk_ref,
                 w_out_ref, b_out_ref, o_ref):
    x = x_ref[...].astype(jnp.float32)                        # (bm, 68)

    # Input projection + ReLU
    h = jnp.dot(x, w_in_ref[...], preferred_element_type=jnp.float32) + b_in_ref[...]
    h = jnp.maximum(h, 0.0)                                   # (bm, 30)

    # Residual blocks (static Python loops; tiny fixed trip counts)
    for blk in range(NUM_BLOCKS):
        out = h
        for layer in range(LAYERS_PER_BLOCK):
            idx = blk * LAYERS_PER_BLOCK + layer
            w = w_blk_ref[idx]                                # (30, 30)
            b = bgb_blk_ref[idx, 0:1, :]                      # (1, 30)
            g = bgb_blk_ref[idx, 1:2, :]                      # (1, 30)
            beta = bgb_blk_ref[idx, 2:3, :]                   # (1, 30)

            out = jnp.dot(out, w, preferred_element_type=jnp.float32) + b
            # One-pass LayerNorm stats (biased variance, like torch.nn.LayerNorm):
            #   var = E[x^2] - mu^2  -> both XLU reductions issue on the same input.
            mu = jnp.mean(out, axis=-1, keepdims=True)
            mean_sq = jnp.mean(out * out, axis=-1, keepdims=True)
            var = mean_sq - mu * mu
            out = (out - mu) * jax.lax.rsqrt(var + LN_EPS) * g + beta
            out = jnp.maximum(out, 0.0)
        h = h + out                                           # residual add

    # Output projection: w_out / b_out are zero-padded to 128 lanes, so this is
    # a full-width unmasked store (real 3 columns sliced in the wrapper).
    y = jnp.dot(h, w_out_ref[...], preferred_element_type=jnp.float32) + b_out_ref[...]
    o_ref[...] = y.astype(o_ref.dtype)                        # (bm, 128)


@functools.partial(jax.jit, static_argnames=("block_m",))
def custom_resnn_forward(x, params, block_m=256):
    B = x.shape[0]
    (w_in, b_in, w_blk, b_blk, g_blk, beta_blk, w_out, b_out) = params

    # Lane-dense output: pad the final projection 3 -> 128 with zeros.
    w_out_pad = jnp.pad(w_out, ((0, 0), (0, OUT_PAD - OUT_DIM)))
    b_out_pad = jnp.pad(b_out, ((0, 0), (0, OUT_PAD - OUT_DIM)))

    # Pack per-layer (bias, gamma, beta) into one array -> fewer inputs/DMAs.
    bgb_blk = jnp.concatenate([b_blk, g_blk, beta_blk], axis=1)   # (n_layers, 3, 30)

    # Batch tile: large enough to amortize per-grid-step overhead (~0.35 us),
    # clamped so tiny batches aren't padded to a huge block. Multiple of 8.
    bm = max(8, min(block_m, ((B + 7) // 8) * 8))
    grid = (pl.cdiv(B, bm),)

    out_pad = pl.pallas_call(
        resnn_kernel,
        out_shape=jax.ShapeDtypeStruct((B, OUT_PAD), x.dtype),
        grid_spec=pltpu.PrefetchScalarGridSpec(
            num_scalar_prefetch=0,
            grid=grid,
            in_specs=[
                pl.BlockSpec((bm, IN_DIM), lambda i: (i, 0)),
                pl.BlockSpec((IN_DIM, HID_DIM), lambda i: (0, 0)),
                pl.BlockSpec((1, HID_DIM), lambda i: (0, 0)),
                pl.BlockSpec((N_LAYERS, HID_DIM, HID_DIM), lambda i: (0, 0, 0)),
                pl.BlockSpec((N_LAYERS, 3, HID_DIM), lambda i: (0, 0, 0)),
                pl.BlockSpec((HID_DIM, OUT_PAD), lambda i: (0, 0)),
                pl.BlockSpec((1, OUT_PAD), lambda i: (0, 0)),
            ],
            out_specs=pl.BlockSpec((bm, OUT_PAD), lambda i: (i, 0)),
        ),
        compiler_params=pltpu.CompilerParams(
            dimension_semantics=("parallel",)),
    )(x, w_in, b_in, w_blk, bgb_blk, w_out_pad, b_out_pad)

    return out_pad[:, :OUT_DIM]


def init_params(key):
    """Deterministic parameter init (PyTorch-Linear-style uniform bounds)."""
    ks = jax.random.split(key, 8)

    def lin_init(k, fan_in, shape_w, shape_b):
        bound = 1.0 / jnp.sqrt(fan_in)
        kw, kb = jax.random.split(k)
        w = jax.random.uniform(kw, shape_w, jnp.float32, -bound, bound)
        b = jax.random.uniform(kb, shape_b, jnp.float32, -bound, bound)
        return w, b

    w_in, b_in = lin_init(ks[0], IN_DIM, (IN_DIM, HID_DIM), (1, HID_DIM))
    w_blk, b_blk = lin_init(ks[1], HID_DIM,
                            (N_LAYERS, HID_DIM, HID_DIM), (N_LAYERS, 1, HID_DIM))
    # LayerNorm affine params (PyTorch default init is ones/zeros)
    g_blk = jnp.ones((N_LAYERS, 1, HID_DIM), jnp.float32)
    beta_blk = jnp.zeros((N_LAYERS, 1, HID_DIM), jnp.float32)
    w_out, b_out = lin_init(ks[2], HID_DIM, (HID_DIM, OUT_DIM), (1, OUT_DIM))
    return (w_in, b_in, w_blk, b_blk, g_blk, beta_blk, w_out, b_out)


def reference_forward(x, params):
    """Pure-JAX reference mirroring the PyTorch forward."""
    (w_in, b_in, w_blk, b_blk, g_blk, beta_blk, w_out, b_out) = params
    h = jnp.maximum(x @ w_in + b_in, 0.0)
    for blk in range(NUM_BLOCKS):
        out = h
        for layer in range(LAYERS_PER_BLOCK):
            idx = blk * LAYERS_PER_BLOCK + layer
            out = out @ w_blk[idx] + b_blk[idx]
            mu = jnp.mean(out, axis=-1, keepdims=True)
            var = jnp.mean((out - mu) ** 2, axis=-1, keepdims=True)
            out = (out - mu) * jax.lax.rsqrt(var + LN_EPS) * g_blk[idx] + beta_blk[idx]
            out = jnp.maximum(out, 0.0)
        h = h + out
    return h @ w_out + b_out


if __name__ == "__main__":
    key = jax.random.PRNGKey(0)
    k_params, k_x1, k_x2 = jax.random.split(key, 3)

    params = init_params(k_params)

    # Small primary test (batch = 8)
    batch = 8
    x = jax.random.normal(k_x1, (batch, IN_DIM), jnp.float32)
    y = jax.block_until_ready(custom_resnn_forward(x, params))
    y_ref = reference_forward(x, params)
    assert y.shape == (batch, OUT_DIM)
    assert jnp.allclose(y, y_ref, atol=1e-3, rtol=1e-3)

    # Ragged-batch test (exercises the padded tail rows / partial edge block)
    batch2 = 50
    x2 = jax.random.normal(k_x2, (batch2, IN_DIM), jnp.float32)
    y2 = jax.block_until_ready(custom_resnn_forward(x2, params))
    y2_ref = reference_forward(x2, params)
    assert y2.shape == (batch2, OUT_DIM)
    assert jnp.allclose(y2, y2_ref, atol=1e-3, rtol=1e-3)

    print("KERNEL_OK")
</pallas_src>

<mosaic_0001>
module attributes {stable_mosaic.version = 11 : i64} {
  func.func @resnn_kernel(%arg0: i32, %arg1: memref<8x68xf32, #tpu.memory_space<vmem>>, %arg2: memref<68x30xf32, #tpu.memory_space<vmem>>, %arg3: memref<1x30xf32, #tpu.memory_space<vmem>>, %arg4: memref<4x30x30xf32, #tpu.memory_space<vmem>>, %arg5: memref<4x3x30xf32, #tpu.memory_space<vmem>>, %arg6: memref<30x128xf32, #tpu.memory_space<vmem>>, %arg7: memref<1x128xf32, #tpu.memory_space<vmem>>, %arg8: memref<8x128xf32, #tpu.memory_space<vmem>>) attributes {dimension_semantics = [#tpu.dimension_semantics<parallel>], iteration_bounds = array<i64: 1>, scalar_prefetch = 0 : i64, scratch_operands = 0 : i64, tpu.core_type = #tpu.core_type<tc>, window_params = [{transform_indices = @transform_0, window_bounds = array<i64: 8, 68>}, {pipeline_mode = #tpu.pipeline_mode<synchronous>, transform_indices = @transform_1, window_bounds = array<i64: 68, 30>}, {pipeline_mode = #tpu.pipeline_mode<synchronous>, transform_indices = @transform_2, window_bounds = array<i64: 1, 30>}, {pipeline_mode = #tpu.pipeline_mode<synchronous>, transform_indices = @transform_3, window_bounds = array<i64: 4, 30, 30>}, {pipeline_mode = #tpu.pipeline_mode<synchronous>, transform_indices = @transform_4, window_bounds = array<i64: 4, 3, 30>}, {pipeline_mode = #tpu.pipeline_mode<synchronous>, transform_indices = @transform_5, window_bounds = array<i64: 30, 128>}, {pipeline_mode = #tpu.pipeline_mode<synchronous>, transform_indices = @transform_6, window_bounds = array<i64: 1, 128>}, {transform_indices = @transform_7, window_bounds = array<i64: 8, 128>}]} {
    %c0 = arith.constant 0 : index
    %c0_0 = arith.constant 0 : index
    %0 = vector.load %arg1[%c0, %c0_0] : memref<8x68xf32, #tpu.memory_space<vmem>>, vector<8x68xf32>
    %c0_1 = arith.constant 0 : index
    %c0_2 = arith.constant 0 : index
    %1 = vector.load %arg2[%c0_1, %c0_2] : memref<68x30xf32, #tpu.memory_space<vmem>>, vector<68x30xf32>
    %cst = arith.constant dense<0.000000e+00> : vector<8x30xf32>
    %2 = tpu.matmul %0, %1, %cst {dimension_numbers = #tpu.dot_dimension_numbers<[1], [0], [0], [1], [0, 0, 1, 1], [], []>} : vector<8x68xf32>, vector<68x30xf32>, vector<8x30xf32> -> vector<8x30xf32>
    %c0_3 = arith.constant 0 : index
    %c0_4 = arith.constant 0 : index
    %3 = vector.load %arg3[%c0_3, %c0_4] : memref<1x30xf32, #tpu.memory_space<vmem>>, vector<1x30xf32>
    %4 = vector.broadcast %3 : vector<1x30xf32> to vector<8x30xf32>
    %5 = arith.addf %2, %4 : vector<8x30xf32>
    %cst_5 = arith.constant 0.000000e+00 : f32
    %6 = vector.broadcast %cst_5 : f32 to vector<8x30xf32>
    %7 = arith.maximumf %5, %6 : vector<8x30xf32>
    %c0_6 = arith.constant 0 : index
    %c0_7 = arith.constant 0 : index
    %c0_8 = arith.constant 0 : index
    %8 = vector.load %arg4[%c0_6, %c0_7, %c0_8] : memref<4x30x30xf32, #tpu.memory_space<vmem>>, vector<1x30x30xf32>
    %9 = vector.shape_cast %8 : vector<1x30x30xf32> to vector<30x30xf32>
    %c0_9 = arith.constant 0 : index
    %c0_10 = arith.constant 0 : index
    %c0_11 = arith.constant 0 : index
    %10 = vector.load %arg5[%c0_9, %c0_10, %c0_11] : memref<4x3x30xf32, #tpu.memory_space<vmem>>, vector<1x1x30xf32>
    %11 = vector.shape_cast %10 : vector<1x1x30xf32> to vector<1x30xf32>
    %c0_12 = arith.constant 0 : index
    %c1 = arith.constant 1 : index
    %c0_13 = arith.constant 0 : index
    %12 = vector.load %arg5[%c0_12, %c1, %c0_13] : memref<4x3x30xf32, #tpu.memory_space<vmem>>, vector<1x1x30xf32>
    %13 = vector.shape_cast %12 : vector<1x1x30xf32> to vector<1x30xf32>
    %c0_14 = arith.constant 0 : index
    %c2 = arith.constant 2 : index
    %c0_15 = arith.constant 0 : index
    %14 = vector.load %arg5[%c0_14, %c2, %c0_15] : memref<4x3x30xf32, #tpu.memory_space<vmem>>, vector<1x1x30xf32>
    %15 = vector.shape_cast %14 : vector<1x1x30xf32> to vector<1x30xf32>
    %cst_16 = arith.constant dense<0.000000e+00> : vector<8x30xf32>
    %16 = tpu.matmul %7, %9, %cst_16 {dimension_numbers = #tpu.dot_dimension_numbers<[1], [0], [0], [1], [0, 0, 1, 1], [], []>} : vector<8x30xf32>, vector<30x30xf32>, vector<8x30xf32> -> vector<8x30xf32>
    %17 = vector.broadcast %11 : vector<1x30xf32> to vector<8x30xf32>
    %18 = arith.addf %16, %17 : vector<8x30xf32>
    %cst_17 = arith.constant dense<0.000000e+00> : vector<8xf32>
    %19 = vector.multi_reduction <add>, %18, %cst_17 [1] : vector<8x30xf32> to vector<8xf32>
    %20 = vector.shape_cast %19 : vector<8xf32> to vector<8x1xf32>
    %cst_18 = arith.constant 3.000000e+01 : f32
    %21 = vector.broadcast %cst_18 : f32 to vector<8x1xf32>
    %22 = arith.divf %20, %21 : vector<8x1xf32>
    %23 = arith.mulf %18, %18 : vector<8x30xf32>
    %cst_19 = arith.constant dense<0.000000e+00> : vector<8xf32>
    %24 = vector.multi_reduction <add>, %23, %cst_19 [1] : vector<8x30xf32> to vector<8xf32>
    %25 = vector.shape_cast %24 : vector<8xf32> to vector<8x1xf32>
    %cst_20 = arith.constant 3.000000e+01 : f32
    %26 = vector.broadcast %cst_20 : f32 to vector<8x1xf32>
    %27 = arith.divf %25, %26 : vector<8x1xf32>
    %28 = arith.mulf %22, %22 : vector<8x1xf32>
    %29 = arith.subf %27, %28 : vector<8x1xf32>
    %30 = vector.broadcast %22 : vector<8x1xf32> to vector<8x30xf32>
    %31 = arith.subf %18, %30 : vector<8x30xf32>
    %cst_21 = arith.constant 9.99999974E-6 : f32
    %32 = vector.broadcast %cst_21 : f32 to vector<8x1xf32>
    %33 = arith.addf %29, %32 : vector<8x1xf32>
    %34 = math.rsqrt %33 : vector<8x1xf32>
    %35 = vector.broadcast %34 : vector<8x1xf32> to vector<8x30xf32>
    %36 = arith.mulf %31, %35 : vector<8x30xf32>
    %37 = vector.broadcast %13 : vector<1x30xf32> to vector<8x30xf32>
    %38 = arith.mulf %36, %37 : vector<8x30xf32>
    %39 = vector.broadcast %15 : vector<1x30xf32> to vector<8x30xf32>
    %40 = arith.addf %38, %39 : vector<8x30xf32>
    %cst_22 = arith.constant 0.000000e+00 : f32
    %41 = vector.broadcast %cst_22 : f32 to vector<8x30xf32>
    %42 = arith.maximumf %40, %41 : vector<8x30xf32>
    %c1_23 = arith.constant 1 : index
    %c0_24 = arith.constant 0 : index
    %c0_25 = arith.constant 0 : index
    %43 = vector.load %arg4[%c1_23, %c0_24, %c0_25] : memref<4x30x30xf32, #tpu.memory_space<vmem>>, vector<1x30x30xf32>
    %44 = vector.shape_cast %43 : vector<1x30x30xf32> to vector<30x30xf32>
    %c1_26 = arith.constant 1 : index
    %c0_27 = arith.constant 0 : index
    %c0_28 = arith.constant 0 : index
    %45 = vector.load %arg5[%c1_26, %c0_27, %c0_28] : memref<4x3x30xf32, #tpu.memory_space<vmem>>, vector<1x1x30xf32>
    %46 = vector.shape_cast %45 : vector<1x1x30xf32> to vector<1x30xf32>
    %c1_29 = arith.constant 1 : index
    %c1_30 = arith.constant 1 : index
    %c0_31 = arith.constant 0 : index
    %47 = vector.load %arg5[%c1_29, %c1_30, %c0_31] : memref<4x3x30xf32, #tpu.memory_space<vmem>>, vector<1x1x30xf32>
    %48 = vector.shape_cast %47 : vector<1x1x30xf32> to vector<1x30xf32>
    %c1_32 = arith.constant 1 : index
    %c2_33 = arith.constant 2 : index
    %c0_34 = arith.constant 0 : index
    %49 = vector.load %arg5[%c1_32, %c2_33, %c0_34] : memref<4x3x30xf32, #tpu.memory_space<vmem>>, vector<1x1x30xf32>
    %50 = vector.shape_cast %49 : vector<1x1x30xf32> to vector<1x30xf32>
    %cst_35 = arith.constant dense<0.000000e+00> : vector<8x30xf32>
    %51 = tpu.matmul %42, %44, %cst_35 {dimension_numbers = #tpu.dot_dimension_numbers<[1], [0], [0], [1], [0, 0, 1, 1], [], []>} : vector<8x30xf32>, vector<30x30xf32>, vector<8x30xf32> -> vector<8x30xf32>
    %52 = vector.broadcast %46 : vector<1x30xf32> to vector<8x30xf32>
    %53 = arith.addf %51, %52 : vector<8x30xf32>
    %cst_36 = arith.constant dense<0.000000e+00> : vector<8xf32>
    %54 = vector.multi_reduction <add>, %53, %cst_36 [1] : vector<8x30xf32> to vector<8xf32>
    %55 = vector.shape_cast %54 : vector<8xf32> to vector<8x1xf32>
    %cst_37 = arith.constant 3.000000e+01 : f32
    %56 = vector.broadcast %cst_37 : f32 to vector<8x1xf32>
    %57 = arith.divf %55, %56 : vector<8x1xf32>
    %58 = arith.mulf %53, %53 : vector<8x30xf32>
    %cst_38 = arith.constant dense<0.000000e+00> : vector<8xf32>
    %59 = vector.multi_reduction <add>, %58, %cst_38 [1] : vector<8x30xf32> to vector<8xf32>
    %60 = vector.shape_cast %59 : vector<8xf32> to vector<8x1xf32>
    %cst_39 = arith.constant 3.000000e+01 : f32
    %61 = vector.broadcast %cst_39 : f32 to vector<8x1xf32>
    %62 = arith.divf %60, %61 : vector<8x1xf32>
    %63 = arith.mulf %57, %57 : vector<8x1xf32>
    %64 = arith.subf %62, %63 : vector<8x1xf32>
    %65 = vector.broadcast %57 : vector<8x1xf32> to vector<8x30xf32>
    %66 = arith.subf %53, %65 : vector<8x30xf32>
    %cst_40 = arith.constant 9.99999974E-6 : f32
    %67 = vector.broadcast %cst_40 : f32 to vector<8x1xf32>
    %68 = arith.addf %64, %67 : vector<8x1xf32>
    %69 = math.rsqrt %68 : vector<8x1xf32>
    %70 = vector.broadcast %69 : vector<8x1xf32> to vector<8x30xf32>
    %71 = arith.mulf %66, %70 : vector<8x30xf32>
    %72 = vector.broadcast %48 : vector<1x30xf32> to vector<8x30xf32>
    %73 = arith.mulf %71, %72 : vector<8x30xf32>
    %74 = vector.broadcast %50 : vector<1x30xf32> to vector<8x30xf32>
    %75 = arith.addf %73, %74 : vector<8x30xf32>
    %cst_41 = arith.constant 0.000000e+00 : f32
    %76 = vector.broadcast %cst_41 : f32 to vector<8x30xf32>
    %77 = arith.maximumf %75, %76 : vector<8x30xf32>
    %78 = arith.addf %7, %77 : vector<8x30xf32>
    %c2_42 = arith.constant 2 : index
    %c0_43 = arith.constant 0 : index
    %c0_44 = arith.constant 0 : index
    %79 = vector.load %arg4[%c2_42, %c0_43, %c0_44] : memref<4x30x30xf32, #tpu.memory_space<vmem>>, vector<1x30x30xf32>
    %80 = vector.shape_cast %79 : vector<1x30x30xf32> to vector<30x30xf32>
    %c2_45 = arith.constant 2 : index
    %c0_46 = arith.constant 0 : index
    %c0_47 = arith.constant 0 : index
    %81 = vector.load %arg5[%c2_45, %c0_46, %c0_47] : memref<4x3x30xf32, #tpu.memory_space<vmem>>, vector<1x1x30xf32>
    %82 = vector.shape_cast %81 : vector<1x1x30xf32> to vector<1x30xf32>
    %c2_48 = arith.constant 2 : index
    %c1_49 = arith.constant 1 : index
    %c0_50 = arith.constant 0 : index
    %83 = vector.load %arg5[%c2_48, %c1_49, %c0_50] : memref<4x3x30xf32, #tpu.memory_space<vmem>>, vector<1x1x30xf32>
    %84 = vector.shape_cast %83 : vector<1x1x30xf32> to vector<1x30xf32>
    %c2_51 = arith.constant 2 : index
    %c2_52 = arith.constant 2 : index
    %c0_53 = arith.constant 0 : index
    %85 = vector.load %arg5[%c2_51, %c2_52, %c0_53] : memref<4x3x30xf32, #tpu.memory_space<vmem>>, vector<1x1x30xf32>
    %86 = vector.shape_cast %85 : vector<1x1x30xf32> to vector<1x30xf32>
    %cst_54 = arith.constant dense<0.000000e+00> : vector<8x30xf32>
    %87 = tpu.matmul %78, %80, %cst_54 {dimension_numbers = #tpu.dot_dimension_numbers<[1], [0], [0], [1], [0, 0, 1, 1], [], []>} : vector<8x30xf32>, vector<30x30xf32>, vector<8x30xf32> -> vector<8x30xf32>
    %88 = vector.broadcast %82 : vector<1x30xf32> to vector<8x30xf32>
    %89 = arith.addf %87, %88 : vector<8x30xf32>
    %cst_55 = arith.constant dense<0.000000e+00> : vector<8xf32>
    %90 = vector.multi_reduction <add>, %89, %cst_55 [1] : vector<8x30xf32> to vector<8xf32>
    %91 = vector.shape_cast %90 : vector<8xf32> to vector<8x1xf32>
    %cst_56 = arith.constant 3.000000e+01 : f32
    %92 = vector.broadcast %cst_56 : f32 to vector<8x1xf32>
    %93 = arith.divf %91, %92 : vector<8x1xf32>
    %94 = arith.mulf %89, %89 : vector<8x30xf32>
    %cst_57 = arith.constant dense<0.000000e+00> : vector<8xf32>
    %95 = vector.multi_reduction <add>, %94, %cst_57 [1] : vector<8x30xf32> to vector<8xf32>
    %96 = vector.shape_cast %95 : vector<8xf32> to vector<8x1xf32>
    %cst_58 = arith.constant 3.000000e+01 : f32
    %97 = vector.broadcast %cst_58 : f32 to vector<8x1xf32>
    %98 = arith.divf %96, %97 : vector<8x1xf32>
    %99 = arith.mulf %93, %93 : vector<8x1xf32>
    %100 = arith.subf %98, %99 : vector<8x1xf32>
    %101 = vector.broadcast %93 : vector<8x1xf32> to vector<8x30xf32>
    %102 = arith.subf %89, %101 : vector<8x30xf32>
    %cst_59 = arith.constant 9.99999974E-6 : f32
    %103 = vector.broadcast %cst_59 : f32 to vector<8x1xf32>
    %104 = arith.addf %100, %103 : vector<8x1xf32>
    %105 = math.rsqrt %104 : vector<8x1xf32>
    %106 = vector.broadcast %105 : vector<8x1xf32> to vector<8x30xf32>
    %107 = arith.mulf %102, %106 : vector<8x30xf32>
    %108 = vector.broadcast %84 : vector<1x30xf32> to vector<8x30xf32>
    %109 = arith.mulf %107, %108 : vector<8x30xf32>
    %110 = vector.broadcast %86 : vector<1x30xf32> to vector<8x30xf32>
    %111 = arith.addf %109, %110 : vector<8x30xf32>
    %cst_60 = arith.constant 0.000000e+00 : f32
    %112 = vector.broadcast %cst_60 : f32 to vector<8x30xf32>
    %113 = arith.maximumf %111, %112 : vector<8x30xf32>
    %c3 = arith.constant 3 : index
    %c0_61 = arith.constant 0 : index
    %c0_62 = arith.constant 0 : index
    %114 = vector.load %arg4[%c3, %c0_61, %c0_62] : memref<4x30x30xf32, #tpu.memory_space<vmem>>, vector<1x30x30xf32>
    %115 = vector.shape_cast %114 : vector<1x30x30xf32> to vector<30x30xf32>
    %c3_63 = arith.constant 3 : index
    %c0_64 = arith.constant 0 : index
    %c0_65 = arith.constant 0 : index
    %116 = vector.load %arg5[%c3_63, %c0_64, %c0_65] : memref<4x3x30xf32, #tpu.memory_space<vmem>>, vector<1x1x30xf32>
    %117 = vector.shape_cast %116 : vector<1x1x30xf32> to vector<1x30xf32>
    %c3_66 = arith.constant 3 : index
    %c1_67 = arith.constant 1 : index
    %c0_68 = arith.constant 0 : index
    %118 = vector.load %arg5[%c3_66, %c1_67, %c0_68] : memref<4x3x30xf32, #tpu.memory_space<vmem>>, vector<1x1x30xf32>
    %119 = vector.shape_cast %118 : vector<1x1x30xf32> to vector<1x30xf32>
    %c3_69 = arith.constant 3 : index
    %c2_70 = arith.constant 2 : index
    %c0_71 = arith.constant 0 : index
    %120 = vector.load %arg5[%c3_69, %c2_70, %c0_71] : memref<4x3x30xf32, #tpu.memory_space<vmem>>, vector<1x1x30xf32>
    %121 = vector.shape_cast %120 : vector<1x1x30xf32> to vector<1x30xf32>
    %cst_72 = arith.constant dense<0.000000e+00> : vector<8x30xf32>
    %122 = tpu.matmul %113, %115, %cst_72 {dimension_numbers = #tpu.dot_dimension_numbers<[1], [0], [0], [1], [0, 0, 1, 1], [], []>} : vector<8x30xf32>, vector<30x30xf32>, vector<8x30xf32> -> vector<8x30xf32>
    %123 = vector.broadcast %117 : vector<1x30xf32> to vector<8x30xf32>
    %124 = arith.addf %122, %123 : vector<8x30xf32>
    %cst_73 = arith.constant dense<0.000000e+00> : vector<8xf32>
    %125 = vector.multi_reduction <add>, %124, %cst_73 [1] : vector<8x30xf32> to vector<8xf32>
    %126 = vector.shape_cast %125 : vector<8xf32> to vector<8x1xf32>
    %cst_74 = arith.constant 3.000000e+01 : f32
    %127 = vector.broadcast %cst_74 : f32 to vector<8x1xf32>
    %128 = arith.divf %126, %127 : vector<8x1xf32>
    %129 = arith.mulf %124, %124 : vector<8x30xf32>
    %cst_75 = arith.constant dense<0.000000e+00> : vector<8xf32>
    %130 = vector.multi_reduction <add>, %129, %cst_75 [1] : vector<8x30xf32> to vector<8xf32>
    %131 = vector.shape_cast %130 : vector<8xf32> to vector<8x1xf32>
    %cst_76 = arith.constant 3.000000e+01 : f32
    %132 = vector.broadcast %cst_76 : f32 to vector<8x1xf32>
    %133 = arith.divf %131, %132 : vector<8x1xf32>
    %134 = arith.mulf %128, %128 : vector<8x1xf32>
    %135 = arith.subf %133, %134 : vector<8x1xf32>
    %136 = vector.broadcast %128 : vector<8x1xf32> to vector<8x30xf32>
    %137 = arith.subf %124, %136 : vector<8x30xf32>
    %cst_77 = arith.constant 9.99999974E-6 : f32
    %138 = vector.broadcast %cst_77 : f32 to vector<8x1xf32>
    %139 = arith.addf %135, %138 : vector<8x1xf32>
    %140 = math.rsqrt %139 : vector<8x1xf32>
    %141 = vector.broadcast %140 : vector<8x1xf32> to vector<8x30xf32>
    %142 = arith.mulf %137, %141 : vector<8x30xf32>
    %143 = vector.broadcast %119 : vector<1x30xf32> to vector<8x30xf32>
    %144 = arith.mulf %142, %143 : vector<8x30xf32>
    %145 = vector.broadcast %121 : vector<1x30xf32> to vector<8x30xf32>
    %146 = arith.addf %144, %145 : vector<8x30xf32>
    %cst_78 = arith.constant 0.000000e+00 : f32
    %147 = vector.broadcast %cst_78 : f32 to vector<8x30xf32>
    %148 = arith.maximumf %146, %147 : vector<8x30xf32>
    %149 = arith.addf %78, %148 : vector<8x30xf32>
    %c0_79 = arith.constant 0 : index
    %c0_80 = arith.constant 0 : index
    %150 = vector.load %arg6[%c0_79, %c0_80] : memref<30x128xf32, #tpu.memory_space<vmem>>, vector<30x128xf32>
    %cst_81 = arith.constant dense<0.000000e+00> : vector<8x128xf32>
    %151 = tpu.matmul %149, %150, %cst_81 {dimension_numbers = #tpu.dot_dimension_numbers<[1], [0], [0], [1], [0, 0, 1, 1], [], []>} : vector<8x30xf32>, vector<30x128xf32>, vector<8x128xf32> -> vector<8x128xf32>
    %c0_82 = arith.constant 0 : index
    %c0_83 = arith.constant 0 : index
    %152 = vector.load %arg7[%c0_82, %c0_83] : memref<1x128xf32, #tpu.memory_space<vmem>>, vector<1x128xf32>
    %153 = vector.broadcast %152 : vector<1x128xf32> to vector<8x128xf32>
    %154 = arith.addf %151, %153 : vector<8x128xf32>
    %c0_84 = arith.constant 0 : index
    %c0_85 = arith.constant 0 : index
    %155 = vector.load %arg8[%c0_84, %c0_85] : memref<8x128xf32, #tpu.memory_space<vmem>>, vector<8x128xf32>
    tpu.vector_store %arg8[%c0_84, %c0_85], %154 {strides = array<i32>} : memref<8x128xf32, #tpu.memory_space<vmem>>, vector<8x128xf32>,
    return
  }
  func.func @transform_0(%arg0: i32) -> (i32, i32) {
    %c0_i32 = arith.constant 0 : i32
    %c0_i32_0 = arith.constant 0 : i32
    return %arg0, %c0_i32 : i32, i32
  }
  func.func @transform_1(%arg0: i32) -> (i32, i32) {
    %c0_i32 = arith.constant 0 : i32
    %c0_i32_0 = arith.constant 0 : i32
    %c0_i32_1 = arith.constant 0 : i32
    return %c0_i32, %c0_i32_0 : i32, i32
  }
  func.func @transform_2(%arg0: i32) -> (i32, i32) {
    %c0_i32 = arith.constant 0 : i32
    %c0_i32_0 = arith.constant 0 : i32
    %c0_i32_1 = arith.constant 0 : i32
    return %c0_i32, %c0_i32_0 : i32, i32
  }
  func.func @transform_3(%arg0: i32) -> (i32, i32, i32) {
    %c0_i32 = arith.constant 0 : i32
    %c0_i32_0 = arith.constant 0 : i32
    %c0_i32_1 = arith.constant 0 : i32
    %c0_i32_2 = arith.constant 0 : i32
    return %c0_i32, %c0_i32_0, %c0_i32_1 : i32, i32, i32
  }
  func.func @transform_4(%arg0: i32) -> (i32, i32, i32) {
    %c0_i32 = arith.constant 0 : i32
    %c0_i32_0 = arith.constant 0 : i32
    %c0_i32_1 = arith.constant 0 : i32
    %c0_i32_2 = arith.constant 0 : i32
    return %c0_i32, %c0_i32_0, %c0_i32_1 : i32, i32, i32
  }
  func.func @transform_5(%arg0: i32) -> (i32, i32) {
    %c0_i32 = arith.constant 0 : i32
    %c0_i32_0 = arith.constant 0 : i32
    %c0_i32_1 = arith.constant 0 : i32
    return %c0_i32, %c0_i32_0 : i32, i32
  }
  func.func @transform_6(%arg0: i32) -> (i32, i32) {
    %c0_i32 = arith.constant 0 : i32
    %c0_i32_0 = arith.constant 0 : i32
    %c0_i32_1 = arith.constant 0 : i32
    return %c0_i32, %c0_i32_0 : i32, i32
  }
  func.func @transform_7(%arg0: i32) -> (i32, i32) {
    %c0_i32 = arith.constant 0 : i32
    %c0_i32_0 = arith.constant 0 : i32
    return %arg0, %c0_i32 : i32, i32
  }
}

</mosaic_0001>

<bundles_post_ra>
// kernel: custom_resnn_forward.1
= control target key start
LH: loop header
LB: loop body
LE: loop exit
PB: predicated region body
PF: predicated region fallthrough
CT: control target
= control target key end

     0   :  { %v894_v0 = vmov 0.0|0.0   ;;  %vm895_vm0 = vmmov 0   ;;  %v896_v4 = vmov 0.0   ;;  %vm47_vm1 = vcmask 1043456   ;;  %s1138_s1 = inlined_call_operand.vmem [shape: f32[68,30], index: 1, kind: input, shape index: {}]   ;;  %s1139_s3 = inlined_call_operand.vmem [shape: f32[4,30,30], index: 3, kind: input, shape index: {}]   ;;  %s1140_s0 = inlined_call_operand.vmem [shape: f32[8,68], index: 0, kind: input, shape index: {}]   ;;  %s1141_s2 = inlined_call_operand.vmem [shape: f32[1,30], index: 2, kind: input, shape index: {}]   ;;  %s1142_s4 = inlined_call_operand.vmem [shape: f32[4,3,30], index: 4, kind: input, shape index: {}]   ;;  %s1143_s5 = inlined_call_operand.vmem [shape: f32[30,128], index: 5, kind: input, shape index: {}]   ;;  %s1144_s6 = inlined_call_operand.vmem [shape: f32[1,128], index: 6, kind: input, shape index: {}]   ;;  %s1145_s7 = inlined_call_operand.vmem [shape: f32[8,128], index: 7, kind: output, shape index: {}]  }
   0x1   :  { %835 = vmatprep.subr.bf16.mxu0 %v894_v0  ;;  %v27_v1 = vld [vmem:[%s1138_s1] sm:$0xff]  ;;  %v28_v2 = vld [vmem:[%s1138_s1 + $0x8] sm:$0xff]  ;;  %v29_v3 = vld [vmem:[%s1138_s1 + $0x10] sm:$0xff]  ;;  %777 = vmatprep.mubr.msk.f32.mxu0 %vm895_vm0, %v896_v4  ;;  %vm43_vm2 = vcmask 556032   ;;  %vm137_vm3 = vcmask 1045504   ;;  %vm897_vm4 = vmmov 1  }
   0x2   :  { %v836_v5 = vpack.c.bf16 %v28_v2, %v27_v1  ;;  %v30_v6 = vld [vmem:[%s1138_s1 + $0x18] sm:$0xff]  ;;  %847 = vmatprep.subr.bf16.mxu1 %v894_v0  ;;  %788 = vmatprep.mubr.msk.f32.mxu1 %vm895_vm0, %v896_v4  ;;  %v122_v8 = vld [vmem:[%s1139_s3] sm:$0xff]  ;;  %v123_v9 = vld [vmem:[%s1139_s3 + $0x8] sm:$0xff]  ;;  %vm133_vm6 = vcmask 244736  }
   0x3   :  { %v839_v7 = vpack.c.bf16 %v30_v6, %v29_v3  ;;  %v31_v10 = vld [vmem:[%s1138_s1 + $0x20] sm:$0xff]  ;;  %v32_v11 = vld [vmem:[%s1138_s1 + $0x28] sm:$0xff]  ;;  %v848_v12 = vpack.c.bf16 %v123_v9, %v122_v8  ;;  %v33_v14 = vld [vmem:[%s1138_s1 + $0x30] sm:$0xff] }
   0x4   :  { %837 = vmatpush3.bf16.msra.mxu0 %v836_v5  ;;  %v842_v13 = vpack.c.bf16 %v32_v11, %v31_v10  ;;  %v34_v15 = vld [vmem:[%s1138_s1 + $0x38] sm:$0xff]  ;;  %v35_v17 = vld [vmem:[%s1138_s1 + $0x40] sm:$0xf]  ;;  %v124_v19 = vld [vmem:[%s1139_s3 + $0x10] sm:$0xff] }
   0x5   :  { %838 = vmatprep.subr.bf16.mxu0 %v894_v0  ;;  %849 = vmatpush3.bf16.msra.mxu1 %v848_v12  ;;  %v845_v16 = vpack.c.bf16 %v34_v15, %v33_v14  ;;  %v26_v18 = vld [vmem:[%s1140_s0] sm:$0xff]  ;;  %v125_v20 = vld [vmem:[%s1139_s3 + $0x18] sm:$0x3f]  ;;  %vm994_vm5 = vmpackc.low %vm137_vm3, %vm897_vm4 }
   0x6   :  { %850 = vmatprep.subr.bf16.mxu1 %v894_v0  ;;  %v851_v21 = vpack.c.bf16 %v125_v20, %v124_v19  ;;  %v677_v23 = vld [vmem:[%s1141_s2] ss:$0 sm:$0xff]  ;;  %v686_v36 = vld [vmem:[%s1139_s3 + $0x28] sm:$0xff]  ;;  %v687_v38 = vld [vmem:[%s1139_s3 + $0x30] sm:$0xff] }
   0x7   :  { %v680_v28 = vld [vmem:[%s1142_s4] ss:$0 sm:$0xff]  ;;  %v688_v39 = vld [vmem:[%s1139_s3 + $0x38] sm:$0x3f]  ;;  %v683_v50 = vld [vmem:[%s1142_s4 + $0x1] ss:$0 sm:$0xff] }
   0x8   :  { %840 = vmatpush3.bf16.msra.mxu0 %v839_v7  ;;  %v685_v35 = vld [vmem:[%s1139_s3 + $0x20] sm:$0xff]  ;;  %v858_v40 = vpack.c.bf16 %v688_v39, %v687_v38  ;;  %v698_v1 = vld [vmem:[%s1139_s3 + $0x48] sm:$0xff]  ;;  %v699_v2 = vld [vmem:[%s1139_s3 + $0x50] sm:$0xff] }
   0x9   :  { %841 = vmatprep.subr.bf16.mxu0 %v894_v0  ;;  %853 = vmatpush3.bf16.msk.msra.mxu1 %vm994_vm5, %v851_v21  ;;  %v855_v37 = vpack.c.bf16 %v686_v36, %v685_v35  ;;  %v684_v52 = vld [vmem:[%s1142_s4 + $0x2] ss:$0 sm:$0xff]  ;;  %v692_v56 = vld [vmem:[%s1142_s4 + $0x4] ss:$0 sm:$0xff]  ;;  %v700_v5 = vld [vmem:[%s1139_s3 + $0x58] sm:$0x3f] }
   0xa   :  { %854 = vmatprep.subr.bf16.mxu1 %v894_v0  ;;  %v697_v63 = vld [vmem:[%s1139_s3 + $0x40] sm:$0xff]  ;;  %v865_v6 = vpack.c.bf16 %v700_v5, %v699_v2 }
   0xb   :  { %v862_v3 = vpack.c.bf16 %v698_v1, %v697_v63 }
   0xc   :  { %843 = vmatpush3.bf16.msra.mxu0 %v842_v13 }
   0xd   :  { %844 = vmatprep.subr.bf16.mxu0 %v894_v0 }
  0x10   :  { %846 = vmatpush3.bf16.msra.mxu0 %v845_v16  ;;  %v695_v16 = vld [vmem:[%s1142_s4 + $0x5] ss:$0 sm:$0xff] }
  0x11   :  { %775 = vmatprep.subr.mxu0 %v896_v4 }
  0x14   :  { %776 = vmatpush3.msk.msra.mxu0 %vm47_vm1, %v35_v17 }
  0x15   :  { %778 = vmatmul.mubr.msk.f32.vlgmr.msra.gmra.mrb[0].mxu0 %vm43_vm2, %v26_v18  ;;  %868 = vmatprep.subr.bf16.mxu0 %v894_v0  ;;  %v696_v18 = vld [vmem:[%s1142_s4 + $0x6] ss:$0 sm:$0xff] }
  0x16   :  { %821 = vmatprep.mubr.msk.f32.mxu0 %vm895_vm0, %v896_v4 }
  0xe8   :  { %v117_v24 = vpop.f32.mrb[0].mxu0 }
  0xe9   :  { %v1004_v25 = vadd.f32 %v677_v23, %v117_v24  ;;  %v779_v26 = vpop.f32.mrb[1].mxu0  ;;  %v704_v24 = vld [vmem:[%s1142_s4 + $0x8] ss:$0 sm:$0xff] }
  0xeb   :  { %v121_v27 = vmax.f32 %v1004_v25, 0.0 }
  0xed   :  { %789 = vmatmul.mubr.msk.f32.vlgmr.msra.gmra.mrb[0].mxu1 %vm133_vm6, %v121_v27 }
  0xee   :  { %799 = vmatprep.mubr.msk.f32.mxu1 %vm895_vm0, %v896_v4  ;;  %856 = vmatpush3.bf16.msra.mxu1 %v855_v37 }
  0xef   :  { %857 = vmatprep.subr.bf16.mxu1 %v894_v0 }
  0xf2   :  { %860 = vmatpush3.bf16.msk.msra.mxu1 %vm994_vm5, %v858_v40 }
  0xf3   :  { %861 = vmatprep.subr.bf16.mxu1 %v894_v0 }
 0x1c0   :  { %v207_v29 = vpop.f32.mrb[0].mxu1 }
 0x1c1   :  { %v208_v30 = vadd.f32 %v680_v28, %v207_v29  ;;  %v790_v31 = vpop.f32.mrb[1].mxu1 }
 0x1c3   :  { %v211_v32 = vsel %vm133_vm6, %v208_v30, 0.0  ;;  %v216_v33 = vmul.f32 %v208_v30, %v208_v30 }
 0x1c4   :  { %212 = vadd.xlane.f32.xlu0 %v211_v32 }
 0x1c5   :  { %v217_v34 = vsel %vm133_vm6, %v216_v33, 0.0  ;;  %v711_v33 = vld [vmem:[%s1139_s3 + $0x70] sm:$0xff] }
 0x1c8   :  { %218 = vadd.xlane.f32.xlu0 %v217_v34  ;;  %v712_v34 = vld [vmem:[%s1139_s3 + $0x78] sm:$0x3f] }
 0x1c9   :  { %v872_v35 = vpack.c.bf16 %v712_v34, %v711_v33 }
 0x251   :  { %v213_v41 = vpop.xlane.xlu0 %212 }
 0x252   :  { %v215_v42 = vmul.f32 0.033333335, %v213_v41 }
 0x254   :  { %v221_v44 = vmul.f32 %v215_v42, %v215_v42  ;;  %v223_v48 = vsub.f32 %v208_v30, %v215_v42 }
 0x255   :  { %v219_v43 = vpop.xlane.xlu0 %218 }
 0x256   :  { %v220_v45 = vmul.f32 0.033333335, %v219_v43 }
 0x258   :  { %v222_v46 = vsub.f32 %v220_v45, %v221_v44  ;;  %v707_v45 = vld [vmem:[%s1142_s4 + $0x9] ss:$0 sm:$0xff] }
 0x25a   :  { %v224_v47 = vadd.f32 1e-05, %v222_v46 }
 0x25c   :  { %886 = vrsqrt.f32 %v224_v47  ;;  %v708_v47 = vld [vmem:[%s1142_s4 + $0xa] ss:$0 sm:$0xff] }
 0x266   :  { %v887_v49 = vpop.eup %886 }
 0x267   :  { %v226_v51 = vmul.f32 %v887_v49, %v223_v48 }
 0x269   :  { %v231_v53 = vmul.f32 %v683_v50, %v226_v51  ;;  %v716_v51 = vld [vmem:[%s1142_s4 + $0xc] ss:$0 sm:$0xff] }
 0x26b   :  { %v236_v54 = vadd.f32 %v684_v52, %v231_v53 }
 0x26d   :  { %v237_v55 = vmax.f32 %v236_v54, 0.0 }
 0x26f   :  { %800 = vmatmul.mubr.msk.f32.vlgmr.msra.gmra.mrb[2].mxu1 %vm133_vm6, %v237_v55 }
 0x270   :  { %810 = vmatprep.mubr.msk.f32.mxu1 %vm895_vm0, %v896_v4  ;;  %863 = vmatpush3.bf16.msra.mxu1 %v862_v3 }
 0x271   :  { %864 = vmatprep.subr.bf16.mxu1 %v894_v0 }
 0x274   :  { %867 = vmatpush3.bf16.msk.msra.mxu1 %vm994_vm5, %v865_v6 }
 0x275   :  { %875 = vmatprep.subr.bf16.mxu1 %v894_v0 }
 0x342   :  { %v323_v57 = vpop.f32.mrb[2].mxu1 }
 0x343   :  { %v324_v58 = vadd.f32 %v692_v56, %v323_v57  ;;  %v801_v59 = vpop.f32.mrb[3].mxu1 }
 0x344   :  { %v586_v59 = vld [vmem:[%s1143_s5 + $0x8] sm:$0xff] }
 0x345   :  { %v327_v60 = vsel %vm133_vm6, %v324_v58, 0.0  ;;  %v331_v61 = vmul.f32 %v324_v58, %v324_v58 }
 0x346   :  { %328 = vadd.xlane.f32.xlu1 %v327_v60 }
 0x347   :  { %v332_v62 = vsel %vm133_vm6, %v331_v61, 0.0  ;;  %v587_v61 = vld [vmem:[%s1143_s5 + $0x10] sm:$0xff] }
 0x34a   :  { %333 = vadd.xlane.f32.xlu1 %v332_v62  ;;  %v588_v62 = vld [vmem:[%s1143_s5 + $0x18] sm:$0x3f] }
 0x34b   :  { %v879_v63 = vpack.c.bf16 %v588_v62, %v587_v61 }
 0x3d3   :  { %v329_v7 = vpop.xlane.xlu1 %328 }
 0x3d4   :  { %v330_v8 = vmul.f32 0.033333335, %v329_v7 }
 0x3d6   :  { %v336_v10 = vmul.f32 %v330_v8, %v330_v8  ;;  %v338_v14 = vsub.f32 %v324_v58, %v330_v8  ;;  %v585_v58 = vld [vmem:[%s1143_s5] sm:$0xff] }
 0x3d7   :  { %v334_v9 = vpop.xlane.xlu1 %333  ;;  %v876_v60 = vpack.c.bf16 %v586_v59, %v585_v58 }
 0x3d8   :  { %v335_v11 = vmul.f32 0.033333335, %v334_v9 }
 0x3da   :  { %v337_v12 = vsub.f32 %v335_v11, %v336_v10  ;;  %v719_v11 = vld [vmem:[%s1142_s4 + $0xd] ss:$0 sm:$0xff] }
 0x3dc   :  { %v339_v13 = vadd.f32 1e-05, %v337_v12 }
 0x3de   :  { %888 = vrsqrt.f32 %v339_v13 }
 0x3e8   :  { %v889_v15 = vpop.eup %888 }
 0x3e9   :  { %v341_v17 = vmul.f32 %v889_v15, %v338_v14 }
 0x3eb   :  { %v346_v19 = vmul.f32 %v695_v16, %v341_v17  ;;  %v721_v16 = vld [vmem:[%s1144_s6] ss:$0 sm:$0xff] }
 0x3ed   :  { %v351_v20 = vadd.f32 %v696_v18, %v346_v19 }
 0x3ef   :  { %v352_v21 = vmax.f32 %v351_v20, 0.0 }
 0x3f1   :  { %v1071_v23 = vadd.f32 %v352_v21, %v121_v27  ;;  %v709_v27 = vld [vmem:[%s1139_s3 + $0x60] sm:$0xff] }
 0x3f3   :  { %811 = vmatmul.mubr.msk.f32.vlgmr.msra.gmra.mrb[4].mxu1 %vm133_vm6, %v1071_v23 }
 0x3f4   :  { %832 = vmatprep.mubr.msk.f32.mxu1 %vm895_vm0, %v896_v4  ;;  %v710_v4 = vld [vmem:[%s1139_s3 + $0x68] sm:$0xff]  ;;  %877 = vmatpush3.bf16.msra.mxu1 %v876_v60 }
 0x3f5   :  { %v869_v32 = vpack.c.bf16 %v710_v4, %v709_v27  ;;  %878 = vmatprep.subr.bf16.mxu1 %v894_v0 }
 0x3f7   :  { %870 = vmatpush3.bf16.msra.mxu0 %v869_v32 }
 0x3f8   :  { %871 = vmatprep.subr.bf16.mxu0 %v894_v0  ;;  %881 = vmatpush3.bf16.msk.msra.mxu1 %vm994_vm5, %v879_v63  ;;  %v720_v0 = vld [vmem:[%s1142_s4 + $0xe] ss:$0 sm:$0xff] }
 0x3fb   :  { %874 = vmatpush3.bf16.msk.msra.mxu0 %vm994_vm5, %v872_v35 }
 0x4c6   :  { %v439_v26 = vpop.f32.mrb[4].mxu1 }
 0x4c7   :  { %v440_v28 = vadd.f32 %v704_v24, %v439_v26  ;;  %v812_v29 = vpop.f32.mrb[5].mxu1 }
 0x4c9   :  { %v443_v30 = vsel %vm133_vm6, %v440_v28, 0.0  ;;  %v447_v31 = vmul.f32 %v440_v28, %v440_v28 }
 0x4ca   :  { %444 = vadd.xlane.f32.xlu0 %v443_v30 }
 0x4cb   :  { %v448_v25 = vsel %vm133_vm6, %v447_v31, 0.0 }
 0x4cc   :  { %449 = vadd.xlane.f32.xlu1 %v448_v25 }
 0x557   :  { %v445_v36 = vpop.xlane.xlu0 %444 }
 0x558   :  { %v446_v37 = vmul.f32 0.033333335, %v445_v36 }
 0x559   :  { %v450_v38 = vpop.xlane.xlu1 %449 }
 0x55a   :  { %v452_v39 = vmul.f32 %v446_v37, %v446_v37  ;;  %v451_v40 = vmul.f32 0.033333335, %v450_v38  ;;  %v454_v43 = vsub.f32 %v440_v28, %v446_v37 }
 0x55c   :  { %v453_v41 = vsub.f32 %v451_v40, %v452_v39 }
 0x55e   :  { %v455_v42 = vadd.f32 1e-05, %v453_v41 }
 0x560   :  { %890 = vrsqrt.f32 %v455_v42 }
 0x56a   :  { %v891_v44 = vpop.eup %890 }
 0x56b   :  { %v457_v46 = vmul.f32 %v891_v44, %v454_v43 }
 0x56d   :  { %v462_v48 = vmul.f32 %v707_v45, %v457_v46 }
 0x56f   :  { %v467_v49 = vadd.f32 %v708_v47, %v462_v48 }
 0x571   :  { %v468_v50 = vmax.f32 %v467_v49, 0.0 }
 0x573   :  { %822 = vmatmul.mubr.msk.f32.vlgmr.msra.gmra.mrb[2].mxu0 %vm133_vm6, %v468_v50 }
 0x646   :  { %v554_v52 = vpop.f32.mrb[2].mxu0 }
 0x647   :  { %v555_v53 = vadd.f32 %v716_v51, %v554_v52  ;;  %v823_v54 = vpop.f32.mrb[3].mxu0 }
 0x649   :  { %v558_v55 = vsel %vm133_vm6, %v555_v53, 0.0  ;;  %v562_v56 = vmul.f32 %v555_v53, %v555_v53 }
 0x64a   :  { %559 = vadd.xlane.f32.xlu0 %v558_v55 }
 0x64b   :  { %v563_v57 = vsel %vm133_vm6, %v562_v56, 0.0 }
 0x64c   :  { %564 = vadd.xlane.f32.xlu1 %v563_v57 }
 0x6d7   :  { %v560_v1 = vpop.xlane.xlu0 %559 }
 0x6d8   :  { %v561_v2 = vmul.f32 0.033333335, %v560_v1 }
 0x6d9   :  { %v565_v3 = vpop.xlane.xlu1 %564 }
 0x6da   :  { %v567_v5 = vmul.f32 %v561_v2, %v561_v2  ;;  %v566_v6 = vmul.f32 0.033333335, %v565_v3  ;;  %v569_v9 = vsub.f32 %v555_v53, %v561_v2 }
 0x6dc   :  { %v568_v7 = vsub.f32 %v566_v6, %v567_v5 }
 0x6de   :  { %v570_v8 = vadd.f32 1e-05, %v568_v7 }
 0x6e0   :  { %892 = vrsqrt.f32 %v570_v8 }
 0x6ea   :  { %v893_v10 = vpop.eup %892 }
 0x6eb   :  { %v572_v12 = vmul.f32 %v893_v10, %v569_v9 }
 0x6ed   :  { %v577_v22 = vmul.f32 %v719_v11, %v572_v12 }
 0x6ef   :  { %v582_v13 = vadd.f32 %v720_v0, %v577_v22 }
 0x6f1   :  { %v583_v14 = vmax.f32 %v582_v13, 0.0 }
 0x6f3   :  { %v584_v15 = vadd.f32 %v583_v14, %v1071_v23 }
 0x6f5   :  { %833 = vmatmul.mubr.msk.f32.vlgmr.msra.gmra.mrb[6].mxu1 %vm133_vm6, %v584_v15 }
 0x7c8   :  { %v668_v17 = vpop.f32.mrb[6].mxu1 }
 0x7c9   :  { %v669_v18 = vadd.f32 %v721_v16, %v668_v17  ;;  %v834_v19 = vpop.f32.mrb[7].mxu1 }
 0x7cb   :  { %672 = vst [vmem:[%s1145_s7] sm:$0xff] %v669_v18 }

</bundles_post_ra>
